<compile_context>
chip_gen: v7x
topology: tpu7x:2x2x1
jax: 0.10.0
libtpu: 0.0.40
codegen_flags: <defaults>
</compile_context>

<pallas_src>
from functools import partial
from typing import Any, Dict, Optional

import jax
import jax.numpy as jnp
from jax.experimental import pallas as pl
from jax.experimental.pallas import tpu as pltpu


_LANE = 128        # lane width: weight N/K dims padded to a multiple of this
_BATCH_ALIGN = 16  # bf16 packs 16 rows per vreg -> batch tiles are 16-row aligned
_TILE_B = 512      # default batch tile (auto-shrunk if VMEM-capped, e.g. on v7x)


def _round_up(n: int, m: int) -> int:
    return ((n + m - 1) // m) * m


def _vmem_cap_bytes() -> int:
    """Usable VMEM budget for this kernel (7/8 of physical, queried per-chip)."""
    try:
        info = pltpu.get_tpu_info()
        phys = int(getattr(info, "vmem_capacity_bytes", 0))
        if phys > 0:
            return phys * 7 // 8          # ~56 MiB on v7x, ~112 MiB on v5e/v6e
    except Exception:
        pass
    return 56 * 1024 * 1024               # safe default (fits v7x's 64 MiB physical)


# ----------------------------- Pallas kernel -------------------------------- #
def _mlp_kernel(x_ref, w1_ref, b1_ref, w2_ref, b2_ref, o_ref):
    # hidden = relu(x @ W1 + b1): bf16 MXU matmul, f32 accumulate, f32 epilogue.
    x = x_ref[...].astype(jnp.bfloat16)              # in-kernel cast (no wrapper copy)
    h = jnp.dot(x, w1_ref[...], preferred_element_type=jnp.float32)
    h = jnp.maximum(h + b1_ref[...], 0.0)            # b1 is [1, H_p] -> broadcast
    # out = hidden @ W2 + b2: cast only the MXU operand back to bf16.
    o = jnp.dot(h.astype(w2_ref.dtype), w2_ref[...],
                preferred_element_type=jnp.float32)
    o_ref[...] = (o + b2_ref[...]).astype(o_ref.dtype)


@partial(jax.jit, static_argnames=("tile_b", "out_dtype"))
def predict_mlp_pallas(x: jax.Array,
                       w1_p: jax.Array, b1_p: jax.Array,
                       w2_p: jax.Array, b2_p: jax.Array,
                       *, tile_b: int = _TILE_B,
                       out_dtype=jnp.float32) -> jax.Array:
    """Fused Linear->ReLU->Linear on TPU via Pallas.

    x:    [B, D_in]      (any float dtype; cast to bf16 in-kernel for the MXU)
    w1_p: [D_in_p, H_p]  bf16, zero-padded to lane multiples
    b1_p: [1, H_p]       f32, zero-padded
    w2_p: [H_p, D_out_p] bf16, zero-padded
    b2_p: [1, D_out_p]   f32, zero-padded
    Returns [B, D_out_p] out_dtype (caller slices the logical D_out columns).
    """
    B, D_in = x.shape
    D_in_p, H_p = w1_p.shape
    _, D_out_p = w2_p.shape
    out_size = jnp.dtype(out_dtype).itemsize
    # Streaming dtype of x: bf16 slab only if D_in needs lane padding.
    x_stream_size = 2 if D_in != D_in_p else x.dtype.itemsize

    # Resident (single-buffered) weight/bias bytes.
    weight_bytes = (w1_p.size * w1_p.dtype.itemsize + w2_p.size * w2_p.dtype.itemsize
                    + b1_p.size * b1_p.dtype.itemsize + b2_p.size * b2_p.dtype.itemsize)

    def _footprint(tb: int) -> int:
        stream = 2 * tb * D_in_p * x_stream_size + 2 * tb * D_out_p * out_size
        scratch = 6 * tb * H_p                  # f32 h + its bf16 cast
        return weight_bytes + stream + scratch + (2 << 20)

    # Even-chunk the batch: >= 2 grid steps when B > 16 (v7x megacore + pipelining),
    # tiles rounded to 16 rows (bf16 sublane packing), minimal padding.
    num_tiles = pl.cdiv(B, tile_b)
    if B > _BATCH_ALIGN:
        num_tiles = max(num_tiles, 2)
    tb = _round_up(pl.cdiv(B, num_tiles), _BATCH_ALIGN)
    vmem_cap = _vmem_cap_bytes()
    while tb > _BATCH_ALIGN and _footprint(tb) > vmem_cap:
        tb = _round_up(max(tb // 2, _BATCH_ALIGN), _BATCH_ALIGN)
    num_tiles = pl.cdiv(B, tb)
    B_p = tb * num_tiles

    # x streaming buffer: no copy unless padding is actually required.
    if D_in != D_in_p:
        x_stream = jnp.zeros((B_p, D_in_p), jnp.bfloat16).at[:B, :D_in].set(
            x.astype(jnp.bfloat16))
    elif B_p != B:
        x_stream = jnp.pad(x, ((0, B_p - B), (0, 0)))
    else:
        x_stream = x

    flops = 2 * B_p * D_in_p * H_p + 2 * B_p * H_p * D_out_p
    bytes_accessed = (B_p * D_in_p * x_stream_size   # x
                      + weight_bytes                 # weights + biases
                      + B_p * D_out_p * out_size)    # output
    vmem_limit = int(max(16 << 20, min(_footprint(tb) + (4 << 20), vmem_cap)))

    out = pl.pallas_call(
        _mlp_kernel,
        out_shape=jax.ShapeDtypeStruct((B_p, D_out_p), out_dtype),
        grid=(num_tiles,),
        in_specs=[
            # x: streamed per batch tile (double-buffered DMA overlaps compute).
            pl.BlockSpec((tb, D_in_p), lambda i: (i, 0)),
            # weights/biases: constant index_map -> VMEM-resident, single-buffered.
            pl.BlockSpec((D_in_p, H_p), lambda i: (0, 0), pipeline_mode=pl.Buffered(1)),
            pl.BlockSpec((1, H_p), lambda i: (0, 0), pipeline_mode=pl.Buffered(1)),
            pl.BlockSpec((H_p, D_out_p), lambda i: (0, 0), pipeline_mode=pl.Buffered(1)),
            pl.BlockSpec((1, D_out_p), lambda i: (0, 0), pipeline_mode=pl.Buffered(1)),
        ],
        out_specs=pl.BlockSpec((tb, D_out_p), lambda i: (i, 0)),
        compiler_params=pltpu.CompilerParams(
            dimension_semantics=("parallel",),   # megacore-shard batch tiles (v7x)
            vmem_limit_bytes=vmem_limit,
        ),
        cost_estimate=pl.CostEstimate(
            flops=flops, transcendentals=0, bytes_accessed=bytes_accessed),
    )(x_stream, w1_p, b1_p, w2_p, b2_p)

    return out[:B]


# --------------------------- PredictModule port ------------------------------ #
class InnerMLPModule:
    """Concrete inner `_module` for PredictModule: a 2-layer MLP over arch."""

    # Production note: for batches below ~128, a plain XLA jnp path beats any
    # Pallas kernel (pure launch/DMA overhead); gate on batch size if needed.
    min_pallas_batch: int = 0

    def __init__(self, in_features: int, hidden: int, out_features: int,
                 key: jax.Array):
        self.in_features = in_features
        self.hidden = hidden
        self.out_features = out_features

        k1, k2, k3, k4 = jax.random.split(key, 4)
        # Deterministic init mirroring nn.Linear (uniform +/- 1/sqrt(fan_in)).
        bound1 = 1.0 / jnp.sqrt(jnp.float32(in_features))
        bound2 = 1.0 / jnp.sqrt(jnp.float32(hidden))
        self.w1 = jax.random.uniform(k1, (in_features, hidden), jnp.float32,
                                     -bound1, bound1)
        self.b1 = jax.random.uniform(k2, (1, hidden), jnp.float32,
                                     -bound1, bound1)
        self.w2 = jax.random.uniform(k3, (hidden, out_features), jnp.float32,
                                     -bound2, bound2)
        self.b2 = jax.random.uniform(k4, (1, out_features), jnp.float32,
                                     -bound2, bound2)

        # Lane-dense, bf16 copies fed to the Pallas kernel (padded once, here).
        # TODO(synk): pad to 256 on v6e/v7x when a dim lands just above a 128
        #             boundary (2x256x256 MXU); 128 is optimal for v5e.
        d_in_p = _round_up(in_features, _LANE)
        h_p = _round_up(hidden, _LANE)
        d_out_p = _round_up(out_features, _LANE)
        self.w1_p = jnp.zeros((d_in_p, h_p), jnp.bfloat16).at[
            :in_features, :hidden].set(self.w1.astype(jnp.bfloat16))
        self.b1_p = jnp.zeros((1, h_p), jnp.float32).at[:, :hidden].set(self.b1)
        self.w2_p = jnp.zeros((h_p, d_out_p), jnp.bfloat16).at[
            :hidden, :out_features].set(self.w2.astype(jnp.bfloat16))
        self.b2_p = jnp.zeros((1, d_out_p), jnp.float32).at[
            :, :out_features].set(self.b2)

    def __call__(self, x: jax.Array, out_dtype=jnp.float32) -> jax.Array:
        y = predict_mlp_pallas(x, self.w1_p, self.b1_p, self.w2_p, self.b2_p,
                               out_dtype=out_dtype)
        return y[:, :self.out_features]     # drop lane padding outside the kernel

    def state_dict(self, prefix: str = "") -> Dict[str, Any]:
        return {
            prefix + "linear1.weight": self.w1.T,  # torch stores [out, in]
            prefix + "linear1.bias": self.b1[0],
            prefix + "linear2.weight": self.w2.T,
            prefix + "linear2.bias": self.b2[0],
        }


class PredictModule:
    """JAX port of torchrec.inference.modules.PredictModule.

    Wraps an inner predict module; `forward` takes a dict of input tensors and
    returns a dict of output tensors (inference only — no grads in JAX anyway,
    which matches torch.inference_mode semantics).
    """

    def __init__(self, module: InnerMLPModule, device: Optional[str] = None) -> None:
        self._module = module
        self._device = device  # device placement handled by JAX; kept for parity

    @property
    def predict_module(self) -> InnerMLPModule:
        return self._module

    def predict_forward(self, batch: Dict[str, jax.Array]) -> Dict[str, jax.Array]:
        # Convert batch input format -> module input format, run, wrap output.
        x = batch["float_features"]
        out = self._module(x)
        return {"default": out}

    def forward(self, batch: Dict[str, jax.Array]) -> Dict[str, jax.Array]:
        # TODO(synk): torch.inference_mode() has no JAX analogue (JAX is functional).
        return self.predict_forward(batch)

    __call__ = forward

    def state_dict(self, destination: Optional[Dict[str, Any]] = None,
                   prefix: str = "") -> Dict[str, Any]:
        sd = self._module.state_dict(prefix)
        if destination is not None:
            destination.update(sd)
            return destination
        return sd


# ---------------------------------- main ------------------------------------ #
if __name__ == "__main__":
    key = jax.random.PRNGKey(0)
    k_params, k_input = jax.random.split(key)

    batch_size, in_features, hidden, out_features = 8, 32, 64, 16

    inner = InnerMLPModule(in_features, hidden, out_features, k_params)
    predict_module = PredictModule(inner, device="tpu")

    x = jax.random.normal(k_input, (batch_size, in_features), jnp.float32)
    batch = {"float_features": x}

    out = predict_module(batch)
    result = jax.block_until_ready(out["default"])
    assert result.shape == (batch_size, out_features)

    # Reference 1: mirrors the kernel's bf16-matmul / f32-accumulate recipe -> tight check.
    xb = x.astype(jnp.bfloat16)
    w1b = inner.w1.astype(jnp.bfloat16)
    w2b = inner.w2.astype(jnp.bfloat16)
    h_ref = jnp.maximum(
        jnp.dot(xb, w1b, preferred_element_type=jnp.float32) + inner.b1, 0.0)
    ref_bf16 = jnp.dot(h_ref.astype(jnp.bfloat16), w2b,
                       preferred_element_type=jnp.float32) + inner.b2
    assert jnp.allclose(result, ref_bf16, atol=1e-3, rtol=1e-3)

    # Reference 2: full-f32 math -> loose check (bf16 MXU rounding tolerance).
    ref_f32 = jnp.maximum(x @ inner.w1 + inner.b1, 0.0) @ inner.w2 + inner.b2
    assert jnp.allclose(result, ref_f32, atol=5e-2, rtol=5e-2)

    print("KERNEL_OK")
</pallas_src>

<mosaic_0001>
module attributes {stable_mosaic.version = 11 : i64} {
  func.func @_mlp_kernel(%arg0: i32, %arg1: memref<16x128xbf16, #tpu.memory_space<vmem>>, %arg2: memref<128x128xbf16, #tpu.memory_space<vmem>>, %arg3: memref<1x128xf32, #tpu.memory_space<vmem>>, %arg4: memref<128x128xbf16, #tpu.memory_space<vmem>>, %arg5: memref<1x128xf32, #tpu.memory_space<vmem>>, %arg6: memref<16x128xf32, #tpu.memory_space<vmem>>) attributes {dimension_semantics = [#tpu.dimension_semantics<parallel>], iteration_bounds = array<i64: 1>, scalar_prefetch = 0 : i64, scratch_operands = 0 : i64, tpu.core_type = #tpu.core_type<tc>, window_params = [{transform_indices = @transform_0, window_bounds = array<i64: 16, 128>}, {pipeline_mode = #tpu.pipeline_mode<synchronous>, transform_indices = @transform_1, window_bounds = array<i64: 128, 128>}, {pipeline_mode = #tpu.pipeline_mode<synchronous>, transform_indices = @transform_2, window_bounds = array<i64: 1, 128>}, {pipeline_mode = #tpu.pipeline_mode<synchronous>, transform_indices = @transform_3, window_bounds = array<i64: 128, 128>}, {pipeline_mode = #tpu.pipeline_mode<synchronous>, transform_indices = @transform_4, window_bounds = array<i64: 1, 128>}, {transform_indices = @transform_5, window_bounds = array<i64: 16, 128>}]} {
    %c0 = arith.constant 0 : index
    %c0_0 = arith.constant 0 : index
    %0 = vector.load %arg1[%c0, %c0_0] : memref<16x128xbf16, #tpu.memory_space<vmem>>, vector<16x128xbf16>
    %c0_1 = arith.constant 0 : index
    %c0_2 = arith.constant 0 : index
    %1 = vector.load %arg2[%c0_1, %c0_2] : memref<128x128xbf16, #tpu.memory_space<vmem>>, vector<128x128xbf16>
    %cst = arith.constant dense<0.000000e+00> : vector<16x128xf32>
    %2 = tpu.matmul %0, %1, %cst {dimension_numbers = #tpu.dot_dimension_numbers<[1], [0], [0], [1], [0, 0, 1, 1], [], []>} : vector<16x128xbf16>, vector<128x128xbf16>, vector<16x128xf32> -> vector<16x128xf32>
    %c0_3 = arith.constant 0 : index
    %c0_4 = arith.constant 0 : index
    %3 = vector.load %arg3[%c0_3, %c0_4] : memref<1x128xf32, #tpu.memory_space<vmem>>, vector<1x128xf32>
    %4 = vector.broadcast %3 : vector<1x128xf32> to vector<16x128xf32>
    %5 = arith.addf %2, %4 : vector<16x128xf32>
    %cst_5 = arith.constant 0.000000e+00 : f32
    %6 = vector.broadcast %cst_5 : f32 to vector<16x128xf32>
    %7 = arith.maximumf %5, %6 : vector<16x128xf32>
    %8 = arith.truncf %7 : vector<16x128xf32> to vector<16x128xbf16>
    %c0_6 = arith.constant 0 : index
    %c0_7 = arith.constant 0 : index
    %9 = vector.load %arg4[%c0_6, %c0_7] : memref<128x128xbf16, #tpu.memory_space<vmem>>, vector<128x128xbf16>
    %cst_8 = arith.constant dense<0.000000e+00> : vector<16x128xf32>
    %10 = tpu.matmul %8, %9, %cst_8 {dimension_numbers = #tpu.dot_dimension_numbers<[1], [0], [0], [1], [0, 0, 1, 1], [], []>} : vector<16x128xbf16>, vector<128x128xbf16>, vector<16x128xf32> -> vector<16x128xf32>
    %c0_9 = arith.constant 0 : index
    %c0_10 = arith.constant 0 : index
    %11 = vector.load %arg5[%c0_9, %c0_10] : memref<1x128xf32, #tpu.memory_space<vmem>>, vector<1x128xf32>
    %12 = vector.broadcast %11 : vector<1x128xf32> to vector<16x128xf32>
    %13 = arith.addf %10, %12 : vector<16x128xf32>
    %c0_11 = arith.constant 0 : index
    %c0_12 = arith.constant 0 : index
    %14 = vector.load %arg6[%c0_11, %c0_12] : memref<16x128xf32, #tpu.memory_space<vmem>>, vector<16x128xf32>
    tpu.vector_store %arg6[%c0_11, %c0_12], %13 {strides = array<i32>} : memref<16x128xf32, #tpu.memory_space<vmem>>, vector<16x128xf32>,
    return
  }
  func.func @transform_0(%arg0: i32) -> (i32, i32) {
    %c0_i32 = arith.constant 0 : i32
    %c0_i32_0 = arith.constant 0 : i32
    return %arg0, %c0_i32 : i32, i32
  }
  func.func @transform_1(%arg0: i32) -> (i32, i32) {
    %c0_i32 = arith.constant 0 : i32
    %c0_i32_0 = arith.constant 0 : i32
    %c0_i32_1 = arith.constant 0 : i32
    return %c0_i32, %c0_i32_0 : i32, i32
  }
  func.func @transform_2(%arg0: i32) -> (i32, i32) {
    %c0_i32 = arith.constant 0 : i32
    %c0_i32_0 = arith.constant 0 : i32
    %c0_i32_1 = arith.constant 0 : i32
    return %c0_i32, %c0_i32_0 : i32, i32
  }
  func.func @transform_3(%arg0: i32) -> (i32, i32) {
    %c0_i32 = arith.constant 0 : i32
    %c0_i32_0 = arith.constant 0 : i32
    %c0_i32_1 = arith.constant 0 : i32
    return %c0_i32, %c0_i32_0 : i32, i32
  }
  func.func @transform_4(%arg0: i32) -> (i32, i32) {
    %c0_i32 = arith.constant 0 : i32
    %c0_i32_0 = arith.constant 0 : i32
    %c0_i32_1 = arith.constant 0 : i32
    return %c0_i32, %c0_i32_0 : i32, i32
  }
  func.func @transform_5(%arg0: i32) -> (i32, i32) {
    %c0_i32 = arith.constant 0 : i32
    %c0_i32_0 = arith.constant 0 : i32
    return %arg0, %c0_i32 : i32, i32
  }
}

</mosaic_0001>

<bundles_post_ra>
// kernel: predict_mlp_pallas.1
= control target key start
LH: loop header
LB: loop body
LE: loop exit
PB: predicated region body
PF: predicated region fallthrough
CT: control target
= control target key end

     0   :  { %10 = vsyncpa [#allocation3], 0  ;;  %s515_s0 = inlined_call_operand.vmem [shape: bf16[16,128], index: 0, kind: input, shape index: {}]   ;;  %s516_s1 = inlined_call_operand.hbm [shape: bf16[128,128], index: 1, kind: input, shape index: {}]   ;;  %s517_s2 = inlined_call_operand.vmem [shape: f32[1,128], index: 2, kind: input, shape index: {}]   ;;  %s518_s3 = inlined_call_operand.hbm [shape: bf16[128,128], index: 3, kind: input, shape index: {}]   ;;  %s519_s4 = inlined_call_operand.vmem [shape: f32[1,128], index: 4, kind: input, shape index: {}]   ;;  %s520_s5 = inlined_call_operand.vmem [shape: f32[16,128], index: 5, kind: output, shape index: {}]  }
   0x1   :  { %11 = vsyncpa [#allocation5], 0  ;;  %s440_s18 = smov [#allocation2]   ;;  %s392_s22 = scalar_lea.hbm %s516_s1, 1024 }
   0x2   :  { %s19_s19 = sshll.u32 %s440_s18, 4  ;;  %p393_p0 = scmp.ne.s32.totalorder %s516_s1, %s392_s22  ;;  %s20_s19 = int_to_ptr.vmem [resolvable:$true] %s19_s19 }
   0x3   :  { %p396_p1 = scmp.lt.u32.totalorder %s392_s22, %s516_s1 }
   0x5   :  { %p398_p2 = pnand %p396_p1, %p393_p0 }
   0x7   :  { %401 = shalt.err (!%p398_p2)
}
   0x8   :  { %s402_s27 = scalar_lea.vmem %s20_s19, 1024  ;;  %p407_p4 = scmp.lt.s32.totalorder %s20_s19, %s20_s19 }
   0x9   :  { %p403_p3 = scmp.ne.s32.totalorder %s20_s19, %s402_s27  ;;  %p408_p5 = scmp.lt.s32.totalorder %s402_s27, %s402_s27 }
   0xb   :  { %p409_p6 = por %p408_p5, %p407_p4 }
   0xd   :  { %p410_p7 = pnand %p409_p6, %p403_p3 }
   0xf   :  { %413 = shalt.err (!%p410_p7)
}
  0x10   :  { %s441_s28 = smov 64   ;;  %s442_s29 = smov 4  }
  0x11   :  { %25 = dma.hbm_to_vmem [thread:$0]  %s516_s1, 1024, %s20_s19, [#allocation3], %s441_s28, %s441_s28, %s442_s29  }
  0x12   :  { %s443_s7 = smov [#allocation4]   ;;  %s414_s11 = scalar_lea.hbm %s518_s3, 1024 }
  0x13   :  { %s33_s8 = sshll.u32 %s443_s7, 4  ;;  %p415_p8 = scmp.ne.s32.totalorder %s518_s3, %s414_s11  ;;  %s34_s8 = int_to_ptr.vmem [resolvable:$true] %s33_s8 }
  0x14   :  { %p418_p9 = scmp.lt.u32.totalorder %s414_s11, %s518_s3 }
  0x16   :  { %p420_p10 = pnand %p418_p9, %p415_p8 }
  0x18   :  { %423 = shalt.err (!%p420_p10)
}
  0x19   :  { %s424_s16 = scalar_lea.vmem %s34_s8, 1024  ;;  %p429_p12 = scmp.lt.s32.totalorder %s34_s8, %s34_s8 }
  0x1a   :  { %p425_p11 = scmp.ne.s32.totalorder %s34_s8, %s424_s16  ;;  %p430_p13 = scmp.lt.s32.totalorder %s424_s16, %s424_s16 }
  0x1c   :  { %p431_p0 = por %p430_p13, %p429_p12 }
  0x1e   :  { %p432_p1 = pnand %p431_p0, %p425_p11 }
  0x20   :  { %435 = shalt.err (!%p432_p1)
}
  0x21   :  { %39 = dma.hbm_to_vmem [thread:$0]  %s518_s3, 1024, %s34_s8, [#allocation5], %s441_s28, %s441_s28, %s442_s29  }
  0x22   :  { %436 = dma.done.wait [#allocation3], 1024  }
  0x23   :  { %437 = vsyncadd [#allocation3], 4294966272 }
  0x24   :  { %438 = dma.done.wait [#allocation5], 1024  }
  0x25   :  { %439 = vsyncadd [#allocation5], 4294966272  ;;  %v444_v0 = vmov 0.0   ;;  %vm445_vm0 = vmmov 0   ;;  %v375_v1 = vld [vmem:[#allocation2] sm:$0xff]   ;;  %v376_v2 = vld [vmem:[#allocation2 + $0x8] sm:$0xff]  }
  0x26   :  { %329 = vmatprep.subr.bf16.mxu0 %v444_v0  ;;  %345 = vmatprep.mubr.msk.bf16.mxu0 %vm445_vm0, %v444_v0  ;;  %v377_v3 = vld [vmem:[#allocation2 + $0x10] sm:$0xff]   ;;  %v384_v4 = vld [vmem:[#allocation4] sm:$0xff]   ;;  %v378_v5 = vld [vmem:[#allocation2 + $0x18] sm:$0xff]  }
  0x27   :  { %349 = vmatprep.subr.bf16.mxu1 %v444_v0  ;;  %365 = vmatprep.mubr.msk.bf16.mxu1 %vm445_vm0, %v444_v0  ;;  %v385_v6 = vld [vmem:[#allocation4 + $0x8] sm:$0xff]   ;;  %v379_v7 = vld [vmem:[#allocation2 + $0x20] sm:$0xff]   ;;  %v386_v8 = vld [vmem:[#allocation4 + $0x10] sm:$0xff]  }
  0x28   :  { %330 = vmatpush3.bf16.msra.mxu0 %v375_v1  ;;  %350 = vmatpush3.bf16.msra.mxu1 %v384_v4  ;;  %v380_v9 = vld [vmem:[#allocation2 + $0x28] sm:$0xff]   ;;  %v387_v10 = vld [vmem:[#allocation4 + $0x18] sm:$0xff]   ;;  %v381_v11 = vld [vmem:[#allocation2 + $0x30] sm:$0xff]  }
  0x29   :  { %331 = vmatprep.subr.bf16.mxu0 %v444_v0  ;;  %351 = vmatprep.subr.bf16.mxu1 %v444_v0  ;;  %v388_v12 = vld [vmem:[#allocation4 + $0x20] sm:$0xff]   ;;  %v382_v13 = vld [vmem:[#allocation2 + $0x38] sm:$0xff]   ;;  %v389_v14 = vld [vmem:[#allocation4 + $0x28] sm:$0xff]  }
  0x2a   :  { %v383_v15 = vld [vmem:[%s515_s0] sm:$0xff]   ;;  %v390_v16 = vld [vmem:[#allocation4 + $0x30] sm:$0xff]   ;;  %v391_v17 = vld [vmem:[#allocation4 + $0x38] sm:$0xff]  }
  0x2b   :  { %v292_v18 = vld [vmem:[%s517_s2] ss:$0 sm:$0xff] }
  0x2c   :  { %332 = vmatpush3.bf16.msra.mxu0 %v376_v2  ;;  %352 = vmatpush3.bf16.msra.mxu1 %v385_v6  ;;  %v302_v28 = vld [vmem:[%s519_s4] ss:$0 sm:$0xff] }
  0x2d   :  { %333 = vmatprep.subr.bf16.mxu0 %v444_v0  ;;  %353 = vmatprep.subr.bf16.mxu1 %v444_v0 }
  0x30   :  { %334 = vmatpush3.bf16.msra.mxu0 %v377_v3  ;;  %354 = vmatpush3.bf16.msra.mxu1 %v386_v8 }
  0x31   :  { %335 = vmatprep.subr.bf16.mxu0 %v444_v0  ;;  %355 = vmatprep.subr.bf16.mxu1 %v444_v0 }
  0x34   :  { %336 = vmatpush3.bf16.msra.mxu0 %v378_v5  ;;  %356 = vmatpush3.bf16.msra.mxu1 %v387_v10 }
  0x35   :  { %337 = vmatprep.subr.bf16.mxu0 %v444_v0  ;;  %357 = vmatprep.subr.bf16.mxu1 %v444_v0 }
  0x38   :  { %338 = vmatpush3.bf16.msra.mxu0 %v379_v7  ;;  %358 = vmatpush3.bf16.msra.mxu1 %v388_v12 }
  0x39   :  { %339 = vmatprep.subr.bf16.mxu0 %v444_v0  ;;  %359 = vmatprep.subr.bf16.mxu1 %v444_v0 }
  0x3c   :  { %340 = vmatpush3.bf16.msra.mxu0 %v380_v9  ;;  %360 = vmatpush3.bf16.msra.mxu1 %v389_v14 }
  0x3d   :  { %341 = vmatprep.subr.bf16.mxu0 %v444_v0  ;;  %361 = vmatprep.subr.bf16.mxu1 %v444_v0 }
  0x40   :  { %342 = vmatpush3.bf16.msra.mxu0 %v381_v11  ;;  %362 = vmatpush3.bf16.msra.mxu1 %v390_v16 }
  0x41   :  { %343 = vmatprep.subr.bf16.mxu0 %v444_v0  ;;  %363 = vmatprep.subr.bf16.mxu1 %v444_v0 }
  0x44   :  { %344 = vmatpush3.bf16.msra.mxu0 %v382_v13  ;;  %364 = vmatpush3.bf16.msra.mxu1 %v391_v17 }
  0x47   :  { %346 = vmatmul.mubr.bf16.vlgmr.msra.gmra.mrb[0].mxu0 %v383_v15 }
 0x11a   :  { %v162_v19 = vpop.f32.mrb[0].mxu0 }
 0x11b   :  { %v163_v20 = vadd.f32 %v292_v18, %v162_v19  ;;  %v347_v21 = vpop.f32.mrb[1].mxu0 }
 0x11c   :  { %v165_v22 = vpop.f32.mrb[2].mxu0 }
 0x11d   :  { %v166_v23 = vadd.f32 %v292_v18, %v165_v22  ;;  %v348_v24 = vpop.f32.mrb[3].mxu0  ;;  %v169_v25 = vmax.f32 %v163_v20, 0.0 }
 0x11f   :  { %v170_v26 = vmax.f32 %v166_v23, 0.0 }
 0x121   :  { %v171_v27 = vpack.c.bf16 %v170_v26, %v169_v25 }
 0x123   :  { %366 = vmatmul.mubr.bf16.vlgmr.msra.gmra.mrb[0].mxu1 %v171_v27 }
 0x1f6   :  { %v277_v29 = vpop.f32.mrb[0].mxu1 }
 0x1f7   :  { %v278_v30 = vadd.f32 %v302_v28, %v277_v29  ;;  %v367_v31 = vpop.f32.mrb[1].mxu1 }
 0x1f8   :  { %v280_v32 = vpop.f32.mrb[2].mxu1 }
 0x1f9   :  { %284 = vst [vmem:[%s520_s5] sm:$0xff] %v278_v30  ;;  %v281_v33 = vadd.f32 %v302_v28, %v280_v32  ;;  %v368_v34 = vpop.f32.mrb[3].mxu1 }
 0x1fb   :  { %285 = vst [vmem:[%s520_s5 + $0x8] sm:$0xff] %v281_v33 }
 0x1fc   :  { %290 = vsyncpa [#allocation3], 1 }
 0x1fd   :  { %291 = vsyncpa [#allocation5], 1 }

</bundles_post_ra>
